<compile_context>
chip_gen: v5e
topology: v5e:2x2
jax: 0.10.0
libtpu: 0.0.40
codegen_flags: <defaults>
</compile_context>

<pallas_src>
import functools

import jax
import jax.numpy as jnp
import numpy as np
from jax import lax
from jax.experimental import pallas as pl
from jax.experimental.pallas import tpu as pltpu

KH = KW = 3
PAD = 1
EPS = 1e-5      # nn.BatchNorm2d default eps
SUBLANE = 8     # f32 sublane tile


def _round_up(x, m):
    return (x + m - 1) // m * m


def _double_conv_kernel(x_ref, w1_ref, w2_ref, m_ref, o_ref, *, img_w):
    """Fused conv1+BN1+ReLU+conv2+BN2+ReLU in a lane-dense (C, N*H*W) layout.

    x_ref : (Cin_p, L)          f32   L = N*H*W, image-major flat layout
    w1_ref: (Cmid_p, 9*Cin_p)   bf16  tap-stacked conv1 weights
    w2_ref: (Cout_p, 9*Cmid_p)  bf16  tap-stacked conv2 weights
    m_ref : (8, L)              f32   per-tap 0/1 boundary masks (centre tap omitted)
    o_ref : (Cout_p, L)         bf16
    """
    L = x_ref.shape[1]
    inv_n = 1.0 / L
    masks = m_ref[...]                                    # (8, L) f32

    def conv3x3(src, w_ref):
        # Build one tap-stacked patch (9*Cp, L) and do a single fat matmul.
        # Shifts are XLU lane rotations; the boundary masks zero every lane
        # whose source pixel lies outside the image — including lanes that
        # wrapped around the L boundary — so no zero-fill is required.
        pieces = []
        mi = 0
        for t in range(KH * KW):
            ry, rx = t // KW - PAD, t % KW - PAD
            s = ry * img_w + rx                           # source lane offset
            if s == 0:
                pieces.append(src)                        # centre: no roll, no mask
            else:
                rolled = pltpu.roll(src, shift=(-s) % L, axis=1)
                pieces.append(rolled * masks[mi:mi + 1, :])
                mi += 1
        patch = jnp.concatenate(pieces, axis=0)           # (9*Cp, L) f32, aligned
        return jnp.dot(w_ref[...], patch.astype(jnp.bfloat16),
                       preferred_element_type=jnp.float32)

    def bn_relu(y):
        # Training-mode BatchNorm2d (biased variance, gamma=1/beta=0 at init)
        # with the two cross-lane reductions fused into one, then ReLU.
        c = y.shape[0]
        stats = jnp.sum(jnp.concatenate([y, y * y], axis=0),
                        axis=1, keepdims=True) * inv_n    # (2c, 1)
        mean, ex2 = stats[:c], stats[c:]
        var = jnp.maximum(ex2 - mean * mean, 0.0)
        return jnp.maximum((y - mean) * lax.rsqrt(var + EPS), 0.0)

    h = bn_relu(conv3x3(x_ref[...], w1_ref))              # (Cmid_p, L) f32
    out = bn_relu(conv3x3(h, w2_ref))                     # (Cout_p, L) f32
    o_ref[...] = out.astype(o_ref.dtype)                  # lane-dense bf16 store


def _stack_weights(w_hwio, cin_p, cout_p):
    """HWIO (3,3,ci,co) -> tap-stacked (cout_p, 9*cin_p) bf16 with zero pad."""
    kh, kw, ci, co = w_hwio.shape
    w = jnp.pad(w_hwio, ((0, 0), (0, 0), (0, cin_p - ci), (0, cout_p - co)))
    w = jnp.transpose(w, (3, 0, 1, 2)).reshape(cout_p, kh * kw * cin_p)
    return w.astype(jnp.bfloat16)


def _boundary_masks(n, h, w):
    """(8, N*H*W) f32 0/1 masks, row-major tap order, centre tap omitted."""
    y_idx, x_idx = np.meshgrid(np.arange(h), np.arange(w), indexing="ij")
    rows = []
    for t in range(KH * KW):
        ry, rx = t // KW - PAD, t % KW - PAD
        if ry == 0 and rx == 0:
            continue
        m = ((y_idx + ry >= 0) & (y_idx + ry < h) &
             (x_idx + rx >= 0) & (x_idx + rx < w)).astype(np.float32)
        rows.append(np.tile(m.reshape(-1), n))
    return jnp.asarray(np.stack(rows, axis=0))


def double_conv2d(x_nchw, w1, b1, w2, b2):
    """x_nchw: (N, Cin, H, W); w*: HWIO (3, 3, Ci, Co); b*: (Co,).

    b1/b2 are accepted for interface parity but unused: a constant per-channel
    conv bias is exactly cancelled by the training-mode BatchNorm mean
    subtraction that immediately follows each conv.  (If the module were run
    with eval-mode/running BN stats, the biases would have to be applied.)
    """
    del b1, b2
    N, Cin, H, W = x_nchw.shape
    Cmid, Cout = w1.shape[-1], w2.shape[-1]
    L = N * H * W

    # Zero-pad channel dims to the f32 sublane tile so the in-kernel tap
    # stacking (sublane concat) and BN stat slicing stay tile-aligned.
    Cin_p, Cmid_p, Cout_p = (_round_up(c, SUBLANE) for c in (Cin, Cmid, Cout))

    # Lane-dense activation layout: (Cin_p, N*H*W) f32.
    x_flat = jnp.transpose(x_nchw, (1, 0, 2, 3)).reshape(Cin, L)
    x_flat = jnp.pad(x_flat, ((0, Cin_p - Cin), (0, 0))).astype(jnp.float32)

    w1_s = _stack_weights(w1, Cin_p, Cmid_p)      # (Cmid_p, 9*Cin_p)  bf16
    w2_s = _stack_weights(w2, Cmid_p, Cout_p)     # (Cout_p, 9*Cmid_p) bf16
    masks = _boundary_masks(N, H, W)              # (8, L) f32

    kernel = functools.partial(_double_conv_kernel, img_w=W)
    out_flat = pl.pallas_call(
        kernel,
        out_shape=jax.ShapeDtypeStruct((Cout_p, L), jnp.bfloat16),
        in_specs=[pl.BlockSpec(memory_space=pltpu.MemorySpace.VMEM)] * 4,
        out_specs=pl.BlockSpec(memory_space=pltpu.MemorySpace.VMEM),
    )(x_flat, w1_s, w2_s, masks)

    # Layout plumbing back to NCHW (kept out of the kernel on purpose; a real
    # multi-layer network would consume the lane-dense (C, L) slab directly).
    out = out_flat[:Cout].reshape(Cout, N, H, W)
    return jnp.transpose(out, (1, 0, 2, 3))


def _reference(x_nchw, w1, b1, w2, b2):
    """Pure-JAX reference of the same forward semantics.

    Conv operands are rounded to bf16 to match the kernel's bf16 MXU operand
    precision (accumulation stays f32), isolating structural correctness.
    """
    f32 = jnp.float32
    bq = lambda a: a.astype(jnp.bfloat16).astype(f32)
    x = jnp.transpose(x_nchw, (0, 2, 3, 1)).astype(f32)

    def conv(h, w, b):
        y = lax.conv_general_dilated(
            bq(h), bq(w), window_strides=(1, 1),
            padding=((PAD, PAD), (PAD, PAD)),
            dimension_numbers=("NHWC", "HWIO", "NHWC"),
            precision=lax.Precision.HIGHEST)
        return y + b

    def bn_relu(y):
        mean = jnp.mean(y, axis=(0, 1, 2), keepdims=True)
        var = jnp.mean((y - mean) ** 2, axis=(0, 1, 2), keepdims=True)
        return jnp.maximum((y - mean) * lax.rsqrt(var + EPS), 0.0)

    y = bn_relu(conv(x, w1, b1))
    y = bn_relu(conv(y, w2, b2))
    return jnp.transpose(y, (0, 3, 1, 2))


def _xavier_normal_relu_hwio(key, kh, kw, cin, cout):
    # nn.init.xavier_normal_(w, gain=calculate_gain('relu')):
    #   std = sqrt(2) * sqrt(2 / (fan_in + fan_out))
    fan_in = cin * kh * kw
    fan_out = cout * kh * kw
    std = np.sqrt(2.0) * np.sqrt(2.0 / (fan_in + fan_out))
    return std * jax.random.normal(key, (kh, kw, cin, cout), jnp.float32)


if __name__ == "__main__":
    # Module config: in_channels=4, out_channels=8 (mid_channels defaults to 8).
    N, Cin, Cmid, Cout, H, W = 2, 4, 8, 8, 16, 16

    key = jax.random.PRNGKey(0)
    kx, k1, k2 = jax.random.split(key, 3)

    x = jax.random.normal(kx, (N, Cin, H, W), jnp.float32)           # NCHW input
    w1 = _xavier_normal_relu_hwio(k1, KH, KW, Cin, Cmid)
    b1 = jnp.zeros((Cmid,), jnp.float32)                             # nn.init.zeros_
    w2 = _xavier_normal_relu_hwio(k2, KH, KW, Cmid, Cout)
    b2 = jnp.zeros((Cout,), jnp.float32)

    out = jax.block_until_ready(double_conv2d(x, w1, b1, w2, b2))
    assert out.shape == (N, Cout, H, W)

    ref = jax.block_until_ready(_reference(x, w1, b1, w2, b2))
    np.testing.assert_allclose(np.asarray(out.astype(jnp.float32)),
                               np.asarray(ref), rtol=2e-2, atol=2e-2)

    print("KERNEL_OK")
</pallas_src>

<mosaic_0001>
module attributes {stable_mosaic.version = 11 : i64} {
  func.func @_double_conv_kernel(%arg0: memref<8x512xf32, #tpu.memory_space<vmem>>, %arg1: memref<8x72xbf16, #tpu.memory_space<vmem>>, %arg2: memref<8x72xbf16, #tpu.memory_space<vmem>>, %arg3: memref<8x512xf32, #tpu.memory_space<vmem>>, %arg4: memref<8x512xbf16, #tpu.memory_space<vmem>>) attributes {dimension_semantics = [], scalar_prefetch = 0 : i64, scratch_operands = 0 : i64, tpu.core_type = #tpu.core_type<tc>} {
    %c0 = arith.constant 0 : index
    %c0_0 = arith.constant 0 : index
    %0 = vector.load %arg3[%c0, %c0_0] : memref<8x512xf32, #tpu.memory_space<vmem>>, vector<8x512xf32>
    %c0_1 = arith.constant 0 : index
    %c0_2 = arith.constant 0 : index
    %1 = vector.load %arg0[%c0_1, %c0_2] : memref<8x512xf32, #tpu.memory_space<vmem>>, vector<8x512xf32>
    %c17_i32 = arith.constant 17 : i32
    %2 = tpu.dynamic_rotate %1 by %c17_i32 dim 1 : vector<8x512xf32>, i32 -> vector<8x512xf32>
    %3 = vector.extract_strided_slice %0 {offsets = [0, 0], sizes = [1, 512], strides = [1, 1]} : vector<8x512xf32> to vector<1x512xf32>
    %4 = vector.broadcast %3 : vector<1x512xf32> to vector<8x512xf32>
    %5 = arith.mulf %2, %4 : vector<8x512xf32>
    %c16_i32 = arith.constant 16 : i32
    %6 = tpu.dynamic_rotate %1 by %c16_i32 dim 1 : vector<8x512xf32>, i32 -> vector<8x512xf32>
    %7 = vector.extract_strided_slice %0 {offsets = [1, 0], sizes = [1, 512], strides = [1, 1]} : vector<8x512xf32> to vector<1x512xf32>
    %8 = vector.broadcast %7 : vector<1x512xf32> to vector<8x512xf32>
    %9 = arith.mulf %6, %8 : vector<8x512xf32>
    %c15_i32 = arith.constant 15 : i32
    %10 = tpu.dynamic_rotate %1 by %c15_i32 dim 1 : vector<8x512xf32>, i32 -> vector<8x512xf32>
    %11 = vector.extract_strided_slice %0 {offsets = [2, 0], sizes = [1, 512], strides = [1, 1]} : vector<8x512xf32> to vector<1x512xf32>
    %12 = vector.broadcast %11 : vector<1x512xf32> to vector<8x512xf32>
    %13 = arith.mulf %10, %12 : vector<8x512xf32>
    %c1_i32 = arith.constant 1 : i32
    %14 = tpu.dynamic_rotate %1 by %c1_i32 dim 1 : vector<8x512xf32>, i32 -> vector<8x512xf32>
    %15 = vector.extract_strided_slice %0 {offsets = [3, 0], sizes = [1, 512], strides = [1, 1]} : vector<8x512xf32> to vector<1x512xf32>
    %16 = vector.broadcast %15 : vector<1x512xf32> to vector<8x512xf32>
    %17 = arith.mulf %14, %16 : vector<8x512xf32>
    %c511_i32 = arith.constant 511 : i32
    %18 = tpu.dynamic_rotate %1 by %c511_i32 dim 1 : vector<8x512xf32>, i32 -> vector<8x512xf32>
    %19 = vector.extract_strided_slice %0 {offsets = [4, 0], sizes = [1, 512], strides = [1, 1]} : vector<8x512xf32> to vector<1x512xf32>
    %20 = vector.broadcast %19 : vector<1x512xf32> to vector<8x512xf32>
    %21 = arith.mulf %18, %20 : vector<8x512xf32>
    %c497_i32 = arith.constant 497 : i32
    %22 = tpu.dynamic_rotate %1 by %c497_i32 dim 1 : vector<8x512xf32>, i32 -> vector<8x512xf32>
    %23 = vector.extract_strided_slice %0 {offsets = [5, 0], sizes = [1, 512], strides = [1, 1]} : vector<8x512xf32> to vector<1x512xf32>
    %24 = vector.broadcast %23 : vector<1x512xf32> to vector<8x512xf32>
    %25 = arith.mulf %22, %24 : vector<8x512xf32>
    %c496_i32 = arith.constant 496 : i32
    %26 = tpu.dynamic_rotate %1 by %c496_i32 dim 1 : vector<8x512xf32>, i32 -> vector<8x512xf32>
    %27 = vector.extract_strided_slice %0 {offsets = [6, 0], sizes = [1, 512], strides = [1, 1]} : vector<8x512xf32> to vector<1x512xf32>
    %28 = vector.broadcast %27 : vector<1x512xf32> to vector<8x512xf32>
    %29 = arith.mulf %26, %28 : vector<8x512xf32>
    %c495_i32 = arith.constant 495 : i32
    %30 = tpu.dynamic_rotate %1 by %c495_i32 dim 1 : vector<8x512xf32>, i32 -> vector<8x512xf32>
    %31 = vector.extract_strided_slice %0 {offsets = [7, 0], sizes = [1, 512], strides = [1, 1]} : vector<8x512xf32> to vector<1x512xf32>
    %32 = vector.broadcast %31 : vector<1x512xf32> to vector<8x512xf32>
    %33 = arith.mulf %30, %32 : vector<8x512xf32>
    %34 = tpu.concatenate %5, %9, %13, %17, %1, %21, %25, %29, %33 in 0 : vector<8x512xf32>, vector<8x512xf32>, vector<8x512xf32>, vector<8x512xf32>, vector<8x512xf32>, vector<8x512xf32>, vector<8x512xf32>, vector<8x512xf32>, vector<8x512xf32> -> vector<72x512xf32>
    %c0_3 = arith.constant 0 : index
    %c0_4 = arith.constant 0 : index
    %35 = vector.load %arg1[%c0_3, %c0_4] : memref<8x72xbf16, #tpu.memory_space<vmem>>, vector<8x72xbf16>
    %36 = arith.truncf %34 : vector<72x512xf32> to vector<72x512xbf16>
    %cst = arith.constant dense<0.000000e+00> : vector<8x512xf32>
    %37 = tpu.matmul %35, %36, %cst {dimension_numbers = #tpu.dot_dimension_numbers<[1], [0], [0], [1], [0, 0, 1, 1], [], []>} : vector<8x72xbf16>, vector<72x512xbf16>, vector<8x512xf32> -> vector<8x512xf32>
    %38 = arith.mulf %37, %37 : vector<8x512xf32>
    %39 = tpu.concatenate %37, %38 in 0 : vector<8x512xf32>, vector<8x512xf32> -> vector<16x512xf32>
    %cst_5 = arith.constant dense<0.000000e+00> : vector<16xf32>
    %40 = vector.multi_reduction <add>, %39, %cst_5 [1] : vector<16x512xf32> to vector<16xf32>
    %41 = vector.shape_cast %40 : vector<16xf32> to vector<16x1xf32>
    %cst_6 = arith.constant 0.001953125 : f32
    %42 = vector.broadcast %cst_6 : f32 to vector<16x1xf32>
    %43 = arith.mulf %41, %42 : vector<16x1xf32>
    %44 = vector.extract_strided_slice %43 {offsets = [0, 0], sizes = [8, 1], strides = [1, 1]} : vector<16x1xf32> to vector<8x1xf32>
    %45 = vector.extract_strided_slice %43 {offsets = [8, 0], sizes = [8, 1], strides = [1, 1]} : vector<16x1xf32> to vector<8x1xf32>
    %46 = arith.mulf %44, %44 : vector<8x1xf32>
    %47 = arith.subf %45, %46 : vector<8x1xf32>
    %cst_7 = arith.constant 0.000000e+00 : f32
    %48 = vector.broadcast %cst_7 : f32 to vector<8x1xf32>
    %49 = arith.maximumf %47, %48 : vector<8x1xf32>
    %50 = vector.broadcast %44 : vector<8x1xf32> to vector<8x512xf32>
    %51 = arith.subf %37, %50 : vector<8x512xf32>
    %cst_8 = arith.constant 9.99999974E-6 : f32
    %52 = vector.broadcast %cst_8 : f32 to vector<8x1xf32>
    %53 = arith.addf %49, %52 : vector<8x1xf32>
    %54 = math.rsqrt %53 : vector<8x1xf32>
    %55 = vector.broadcast %54 : vector<8x1xf32> to vector<8x512xf32>
    %56 = arith.mulf %51, %55 : vector<8x512xf32>
    %cst_9 = arith.constant 0.000000e+00 : f32
    %57 = vector.broadcast %cst_9 : f32 to vector<8x512xf32>
    %58 = arith.maximumf %56, %57 : vector<8x512xf32>
    %c17_i32_10 = arith.constant 17 : i32
    %59 = tpu.dynamic_rotate %58 by %c17_i32_10 dim 1 : vector<8x512xf32>, i32 -> vector<8x512xf32>
    %60 = vector.extract_strided_slice %0 {offsets = [0, 0], sizes = [1, 512], strides = [1, 1]} : vector<8x512xf32> to vector<1x512xf32>
    %61 = vector.broadcast %60 : vector<1x512xf32> to vector<8x512xf32>
    %62 = arith.mulf %59, %61 : vector<8x512xf32>
    %c16_i32_11 = arith.constant 16 : i32
    %63 = tpu.dynamic_rotate %58 by %c16_i32_11 dim 1 : vector<8x512xf32>, i32 -> vector<8x512xf32>
    %64 = vector.extract_strided_slice %0 {offsets = [1, 0], sizes = [1, 512], strides = [1, 1]} : vector<8x512xf32> to vector<1x512xf32>
    %65 = vector.broadcast %64 : vector<1x512xf32> to vector<8x512xf32>
    %66 = arith.mulf %63, %65 : vector<8x512xf32>
    %c15_i32_12 = arith.constant 15 : i32
    %67 = tpu.dynamic_rotate %58 by %c15_i32_12 dim 1 : vector<8x512xf32>, i32 -> vector<8x512xf32>
    %68 = vector.extract_strided_slice %0 {offsets = [2, 0], sizes = [1, 512], strides = [1, 1]} : vector<8x512xf32> to vector<1x512xf32>
    %69 = vector.broadcast %68 : vector<1x512xf32> to vector<8x512xf32>
    %70 = arith.mulf %67, %69 : vector<8x512xf32>
    %c1_i32_13 = arith.constant 1 : i32
    %71 = tpu.dynamic_rotate %58 by %c1_i32_13 dim 1 : vector<8x512xf32>, i32 -> vector<8x512xf32>
    %72 = vector.extract_strided_slice %0 {offsets = [3, 0], sizes = [1, 512], strides = [1, 1]} : vector<8x512xf32> to vector<1x512xf32>
    %73 = vector.broadcast %72 : vector<1x512xf32> to vector<8x512xf32>
    %74 = arith.mulf %71, %73 : vector<8x512xf32>
    %c511_i32_14 = arith.constant 511 : i32
    %75 = tpu.dynamic_rotate %58 by %c511_i32_14 dim 1 : vector<8x512xf32>, i32 -> vector<8x512xf32>
    %76 = vector.extract_strided_slice %0 {offsets = [4, 0], sizes = [1, 512], strides = [1, 1]} : vector<8x512xf32> to vector<1x512xf32>
    %77 = vector.broadcast %76 : vector<1x512xf32> to vector<8x512xf32>
    %78 = arith.mulf %75, %77 : vector<8x512xf32>
    %c497_i32_15 = arith.constant 497 : i32
    %79 = tpu.dynamic_rotate %58 by %c497_i32_15 dim 1 : vector<8x512xf32>, i32 -> vector<8x512xf32>
    %80 = vector.extract_strided_slice %0 {offsets = [5, 0], sizes = [1, 512], strides = [1, 1]} : vector<8x512xf32> to vector<1x512xf32>
    %81 = vector.broadcast %80 : vector<1x512xf32> to vector<8x512xf32>
    %82 = arith.mulf %79, %81 : vector<8x512xf32>
    %c496_i32_16 = arith.constant 496 : i32
    %83 = tpu.dynamic_rotate %58 by %c496_i32_16 dim 1 : vector<8x512xf32>, i32 -> vector<8x512xf32>
    %84 = vector.extract_strided_slice %0 {offsets = [6, 0], sizes = [1, 512], strides = [1, 1]} : vector<8x512xf32> to vector<1x512xf32>
    %85 = vector.broadcast %84 : vector<1x512xf32> to vector<8x512xf32>
    %86 = arith.mulf %83, %85 : vector<8x512xf32>
    %c495_i32_17 = arith.constant 495 : i32
    %87 = tpu.dynamic_rotate %58 by %c495_i32_17 dim 1 : vector<8x512xf32>, i32 -> vector<8x512xf32>
    %88 = vector.extract_strided_slice %0 {offsets = [7, 0], sizes = [1, 512], strides = [1, 1]} : vector<8x512xf32> to vector<1x512xf32>
    %89 = vector.broadcast %88 : vector<1x512xf32> to vector<8x512xf32>
    %90 = arith.mulf %87, %89 : vector<8x512xf32>
    %91 = tpu.concatenate %62, %66, %70, %74, %58, %78, %82, %86, %90 in 0 : vector<8x512xf32>, vector<8x512xf32>, vector<8x512xf32>, vector<8x512xf32>, vector<8x512xf32>, vector<8x512xf32>, vector<8x512xf32>, vector<8x512xf32>, vector<8x512xf32> -> vector<72x512xf32>
    %c0_18 = arith.constant 0 : index
    %c0_19 = arith.constant 0 : index
    %92 = vector.load %arg2[%c0_18, %c0_19] : memref<8x72xbf16, #tpu.memory_space<vmem>>, vector<8x72xbf16>
    %93 = arith.truncf %91 : vector<72x512xf32> to vector<72x512xbf16>
    %cst_20 = arith.constant dense<0.000000e+00> : vector<8x512xf32>
    %94 = tpu.matmul %92, %93, %cst_20 {dimension_numbers = #tpu.dot_dimension_numbers<[1], [0], [0], [1], [0, 0, 1, 1], [], []>} : vector<8x72xbf16>, vector<72x512xbf16>, vector<8x512xf32> -> vector<8x512xf32>
    %95 = arith.mulf %94, %94 : vector<8x512xf32>
    %96 = tpu.concatenate %94, %95 in 0 : vector<8x512xf32>, vector<8x512xf32> -> vector<16x512xf32>
    %cst_21 = arith.constant dense<0.000000e+00> : vector<16xf32>
    %97 = vector.multi_reduction <add>, %96, %cst_21 [1] : vector<16x512xf32> to vector<16xf32>
    %98 = vector.shape_cast %97 : vector<16xf32> to vector<16x1xf32>
    %cst_22 = arith.constant 0.001953125 : f32
    %99 = vector.broadcast %cst_22 : f32 to vector<16x1xf32>
    %100 = arith.mulf %98, %99 : vector<16x1xf32>
    %101 = vector.extract_strided_slice %100 {offsets = [0, 0], sizes = [8, 1], strides = [1, 1]} : vector<16x1xf32> to vector<8x1xf32>
    %102 = vector.extract_strided_slice %100 {offsets = [8, 0], sizes = [8, 1], strides = [1, 1]} : vector<16x1xf32> to vector<8x1xf32>
    %103 = arith.mulf %101, %101 : vector<8x1xf32>
    %104 = arith.subf %102, %103 : vector<8x1xf32>
    %cst_23 = arith.constant 0.000000e+00 : f32
    %105 = vector.broadcast %cst_23 : f32 to vector<8x1xf32>
    %106 = arith.maximumf %104, %105 : vector<8x1xf32>
    %107 = vector.broadcast %101 : vector<8x1xf32> to vector<8x512xf32>
    %108 = arith.subf %94, %107 : vector<8x512xf32>
    %cst_24 = arith.constant 9.99999974E-6 : f32
    %109 = vector.broadcast %cst_24 : f32 to vector<8x1xf32>
    %110 = arith.addf %106, %109 : vector<8x1xf32>
    %111 = math.rsqrt %110 : vector<8x1xf32>
    %112 = vector.broadcast %111 : vector<8x1xf32> to vector<8x512xf32>
    %113 = arith.mulf %108, %112 : vector<8x512xf32>
    %cst_25 = arith.constant 0.000000e+00 : f32
    %114 = vector.broadcast %cst_25 : f32 to vector<8x512xf32>
    %115 = arith.maximumf %113, %114 : vector<8x512xf32>
    %116 = arith.truncf %115 : vector<8x512xf32> to vector<8x512xbf16>
    %c0_26 = arith.constant 0 : index
    %c0_27 = arith.constant 0 : index
    %117 = vector.load %arg4[%c0_26, %c0_27] : memref<8x512xbf16, #tpu.memory_space<vmem>>, vector<8x512xbf16>
    tpu.vector_store %arg4[%c0_26, %c0_27], %116 {strides = array<i32>} : memref<8x512xbf16, #tpu.memory_space<vmem>>, vector<8x512xbf16>,
    return
  }
}

</mosaic_0001>

<bundles_post_ra>
// kernel: tpu_custom_call.1
= control target key start
LH: loop header
LB: loop body
LE: loop exit
PB: predicated region body
PF: predicated region fallthrough
CT: control target
= control target key end

     0   :  { %9 = vsyncpa [#allocation3], 0  ;;  %s1365_s0 = inlined_call_operand.hbm [shape: f32[8,512], index: 0, kind: input, shape index: {}]   ;;  %s1366_s1 = inlined_call_operand.hbm [shape: bf16[8,72], index: 1, kind: input, shape index: {}]   ;;  %s1367_s2 = inlined_call_operand.hbm [shape: bf16[8,72], index: 2, kind: input, shape index: {}]   ;;  %s1368_s3 = inlined_call_operand.hbm [shape: f32[8,512], index: 3, kind: input, shape index: {}]   ;;  %s1369_s4 = inlined_call_operand.hbm [shape: bf16[8,512], index: 4, kind: output, shape index: {}]  }
   0x1   :  { %10 = vsyncpa [#allocation6], 0 }
   0x2   :  { %11 = vsyncpa [#allocation9], 0  ;;  %s29_s17 = sshll.u32 %s1366_s1, 4  ;;  %s30_s17 = int_to_ptr.hbm [resolvable:$true] %s29_s17 }
   0x3   :  { %12 = vsyncpa [#allocation4], 0  ;;  %s818_s18 = smov [#allocation5]   ;;  %s18_s22 = sshll.u32 %s1365_s0, 4  ;;  %s19_s22 = int_to_ptr.hbm [resolvable:$true] %s18_s22 }
   0x4   :  { %s31_s19 = sshll.u32 %s818_s18, 4  ;;  %s819_s23 = smov [#allocation2]   ;;  %s32_s19 = int_to_ptr.vmem [resolvable:$true] %s31_s19 }
   0x5   :  { %34 = dma.hbm_to_vmem [thread:$0]  %s30_s17, 64, %s32_s19, [#allocation6]  }
   0x6   :  { %s20_s24 = sshll.u32 %s819_s23, 4  ;;  %s40_s27 = sshll.u32 %s1367_s2, 4  ;;  %s21_s24 = int_to_ptr.vmem [resolvable:$true] %s20_s24  ;;  %s41_s27 = int_to_ptr.hbm [resolvable:$true] %s40_s27 }
   0x7   :  { %23 = dma.hbm_to_vmem [thread:$0]  %s19_s22, 512, %s21_s24, [#allocation3]  }
   0x8   :  { %s51_s29 = sshll.u32 %s1368_s3, 4  ;;  %s820_s30 = smov [#allocation7]   ;;  %s52_s29 = int_to_ptr.hbm [resolvable:$true] %s51_s29 }
   0x9   :  { %s42_s5 = sshll.u32 %s820_s30, 4  ;;  %s821_s0 = smov [#allocation8]   ;;  %s43_s5 = int_to_ptr.vmem [resolvable:$true] %s42_s5 }
   0xa   :  { %45 = dma.hbm_to_vmem [thread:$0]  %s41_s27, 64, %s43_s5, [#allocation6]  }
   0xb   :  { %s53_s6 = sshll.u32 %s821_s0, 4  ;;  %s54_s6 = int_to_ptr.vmem [resolvable:$true] %s53_s6 }
   0xc   :  { %56 = dma.hbm_to_vmem [thread:$0]  %s52_s29, 512, %s54_s6, [#allocation9]  }
   0xd   :  { %810 = dma.done.wait [#allocation3], 512  }
   0xe   :  { %811 = vsyncadd [#allocation3], 4294966784 }
   0xf   :  { %812 = dma.done.wait [#allocation6], 128  }
  0x10   :  { %813 = vsyncadd [#allocation6], 4294967168 }
  0x11   :  { %814 = dma.done.wait [#allocation9], 512  }
  0x12   :  { %815 = vsyncadd [#allocation9], 4294966784  ;;  %v868_v0 = vld [vmem:[#allocation2 + $0x10] sm:$0xff]  ;;  %v870_v1 = vld [vmem:[#allocation2] sm:$0xff]  ;;  %s822_s2 = smov 113   ;;  %s823_s3 = smov 111   ;;  %v90_v6 = vlaneseq }
  0x13   :  { %193 = vrot.lane.b32.xlu2 %v868_v0, %s822_s2  ;;  %235 = vrot.lane.b32.xlu0 %v868_v0, %s823_s3  ;;  %v878_v2 = vld [vmem:[#allocation2 + $0x18] sm:$0xff]  ;;  %v880_v3 = vld [vmem:[#allocation2 + $0x8] sm:$0xff]  ;;  %s824_s7 = smov 112   ;;  %s825_s8 = smov 127   ;;  %v946_v11 = vld [vmem:[#allocation8 + $0x18] sm:$0xff]  ;;  %vm277_vm1 = vcmask 1043456  }
  0x14   :  { %231 = vrot.lane.b32.xlu1 %v870_v1, %s823_s3  ;;  %s826_s9 = smov 15   ;;  %s827_s10 = smov 1   ;;  %v944_v10 = vand.u32 127, %v90_v6  ;;  %v948_v12 = vld [vmem:[#allocation8] sm:$0xff]  ;;  %v950_v13 = vld [vmem:[#allocation8 + $0x8] sm:$0xff]  ;;  %v952_v14 = vld [vmem:[#allocation8 + $0x10] sm:$0xff] }
  0x15   :  { %s828_s11 = smov 17   ;;  %s829_s12 = smov 16   ;;  %v246_v15 = vperm.slane %v952_v14, 7  ;;  %v244_v16 = vperm.slane %v948_v12, 7  ;;  %v245_v17 = vperm.slane %v950_v13, 7  ;;  %v247_v18 = vperm.slane %v946_v11, 7 }
  0x16   :  { %vm239_vm0 = vcmp.lt.s32.totalorder %v944_v10, 111  ;;  %vm197_vm2 = vcmp.lt.s32.totalorder %v944_v10, 113  ;;  %v204_v34 = vperm.slane %v952_v14, 5  ;;  %vm218_vm3 = vcmp.lt.s32.totalorder %v944_v10, 112  ;;  %s830_s13 = smov [#allocation10]   ;;  %s653_s17 = sshll.u32 %s1369_s4, 4  ;;  %s654_s17 = int_to_ptr.hbm [resolvable:$true] %s653_s17 }
  0x17   :  { %v225_v39 = vperm.slane %v952_v14, 6  ;;  %v205_v48 = vperm.slane %v946_v11, 5  ;;  %vm176_vm4 = vcmp.lt.s32.totalorder %v944_v10, 127  ;;  %v184_v49 = vperm.slane %v946_v11, 4  ;;  %s651_s14 = sshll.u32 %s830_s13, 4  ;;  %s652_s14 = int_to_ptr.vmem [resolvable:$true] %s651_s14 }
  0x18   :  { %v226_v50 = vperm.slane %v946_v11, 6  ;;  %v183_v53 = vperm.slane %v952_v14, 4  ;;  %v203_v6 = vperm.slane %v950_v13, 5  ;;  %vm134_vm5 = vcmp.lt.s32.totalorder %v944_v10, 15 }
  0x19   :  { %vm155_vm6 = vcmp.lt.s32.totalorder %v944_v10, 1  ;;  %vm92_vm7 = vcmp.lt.s32.totalorder %v944_v10, 17  ;;  %vm113_vm8 = vcmp.lt.s32.totalorder %v944_v10, 16  ;;  %vm273_vm9 = vcmask 588800  }
  0x1b   :  { %195 = vrot.lane.b32.xlu2 %v878_v2, %s822_s2  ;;  %237 = vrot.lane.b32.xlu0 %v878_v2, %s823_s3 }
  0x1c   :  { %233 = vrot.lane.b32.xlu1 %v880_v3, %s823_s3 }
  0x23   :  { %214 = vrot.lane.b32.xlu0 %v868_v0, %s824_s7  ;;  %189 = vrot.lane.b32.xlu2 %v870_v1, %s822_s2 }
  0x24   :  { %216 = vrot.lane.b32.xlu1 %v878_v2, %s824_s7 }
  0x2b   :  { %210 = vrot.lane.b32.xlu0 %v870_v1, %s824_s7  ;;  %174 = vrot.lane.b32.xlu2 %v878_v2, %s825_s8 }
  0x2c   :  { %172 = vrot.lane.b32.xlu1 %v868_v0, %s825_s8 }
  0x33   :  { %191 = vrot.lane.b32.xlu0 %v880_v3, %s822_s2  ;;  %168 = vrot.lane.b32.xlu2 %v870_v1, %s825_s8 }
  0x34   :  { %212 = vrot.lane.b32.xlu1 %v880_v3, %s824_s7 }
  0x3b   :  { %128 = vrot.lane.b32.xlu0 %v880_v3, %s826_s9  ;;  %149 = vrot.lane.b32.xlu2 %v880_v3, %s827_s10 }
  0x3c   :  { %130 = vrot.lane.b32.xlu1 %v868_v0, %s826_s9 }
  0x43   :  { %151 = vrot.lane.b32.xlu0 %v868_v0, %s827_s10  ;;  %132 = vrot.lane.b32.xlu2 %v878_v2, %s826_s9 }
  0x44   :  { %170 = vrot.lane.b32.xlu1 %v880_v3, %s825_s8 }
  0x4b   :  { %153 = vrot.lane.b32.xlu0 %v878_v2, %s827_s10  ;;  %86 = vrot.lane.b32.xlu2 %v868_v0, %s828_s11 }
  0x4c   :  { %84 = vrot.lane.b32.xlu1 %v880_v3, %s828_s11 }
  0x53   :  { %107 = vrot.lane.b32.xlu0 %v880_v3, %s829_s12  ;;  %126 = vrot.lane.b32.xlu2 %v870_v1, %s826_s9 }
  0x54   :  { %109 = vrot.lane.b32.xlu1 %v868_v0, %s829_s12 }
  0x5b   :  { %147 = vrot.lane.b32.xlu0 %v870_v1, %s827_s10  ;;  %111 = vrot.lane.b32.xlu2 %v878_v2, %s829_s12 }
  0x5c   :  { %88 = vrot.lane.b32.xlu1 %v878_v2, %s828_s11 }
  0x63   :  { %82 = vrot.lane.b32.xlu0 %v870_v1, %s828_s11 }
  0x64   :  { %105 = vrot.lane.b32.xlu1 %v870_v1, %s829_s12 }
  0x6d   :  { %v940_v4 = vpop.permute.xlu2 %193 }
  0x75   :  { %v196_v5 = vpop.permute.xlu2 %195 }
  0x76   :  { %v198_v40 = vsel %vm197_vm2, %v940_v4, %v196_v5 }
  0x77   :  { %v208_v44 = vmul.f32 %v204_v34, %v198_v40 }
  0x7d   :  { %v942_v8 = vpop.permute.xlu2 %189 }
  0x7e   :  { %v201_v51 = vsel %vm197_vm2, %v196_v5, %v942_v8  ;;  %v202_v5 = vperm.slane %v948_v12, 5 }
  0x7f   :  { %v209_v57 = vmul.f32 %v205_v48, %v201_v51 }
  0x85   :  { %v236_v7 = vpop.permute.xlu0 %235  ;;  %v175_v26 = vpop.permute.xlu2 %174 }
  0x86   :  { %v232_v9 = vpop.permute.xlu1 %231 }
  0x8d   :  { %v238_v19 = vpop.permute.xlu0 %237  ;;  %v169_v46 = vpop.permute.xlu2 %168 }
  0x8e   :  { %v240_v20 = vsel %vm239_vm0, %v236_v7, %v238_v19  ;;  %v243_v21 = vsel %vm239_vm0, %v238_v19, %v232_v9  ;;  %v234_v22 = vpop.permute.xlu1 %233  ;;  %v180_v52 = vsel %vm176_vm4, %v175_v26, %v169_v46  ;;  %v223_v19 = vperm.slane %v948_v12, 6 }
  0x8f   :  { %v241_v23 = vsel %vm239_vm0, %v234_v22, %v236_v7  ;;  %v242_v24 = vsel %vm239_vm0, %v232_v9, %v234_v22  ;;  %v250_v25 = vmul.f32 %v246_v15, %v240_v20  ;;  %v251_v29 = vmul.f32 %v247_v18, %v243_v21 }
  0x90   :  { %v248_v27 = vmul.f32 %v244_v16, %v242_v24  ;;  %v249_v28 = vmul.f32 %v245_v17, %v241_v23  ;;  %v188_v58 = vmul.f32 %v184_v49, %v180_v52  ;;  %v224_v20 = vperm.slane %v950_v13, 6 }
  0x91   :  { %v271_v30 = vpack.c.bf16 %v250_v25, %v250_v25  ;;  %v272_v33 = vpack.c.bf16 %v251_v29, %v251_v29 }
  0x92   :  { %v269_v31 = vpack.c.bf16 %v248_v27, %v248_v27  ;;  %v270_v32 = vpack.c.bf16 %v249_v28, %v249_v28  ;;  %v264_v7 = vpack.c.bf16 %v188_v58, %v878_v2  ;;  %v142_v58 = vperm.slane %v946_v11, 2 }
  0x93   :  { %v285_v35 = vsel %vm277_vm1, %v271_v30, 0  ;;  %v288_v38 = vsel %vm277_vm1, %v272_v33, 0  ;;  %v162_v33 = vperm.slane %v952_v14, 3 }
  0x94   :  { %v279_v36 = vsel %vm277_vm1, %v269_v31, 0  ;;  %v282_v37 = vsel %vm277_vm1, %v270_v32, 0  ;;  %319 = vmatpush.bf16.msra.mxu2 %v285_v35  ;;  %332 = vmatpush.bf16.msra.mxu3 %v288_v38  ;;  %v141_v32 = vperm.slane %v952_v14, 2 }
  0x95   :  { %293 = vmatpush.bf16.msra.mxu0 %v279_v36  ;;  %306 = vmatpush.bf16.msra.mxu1 %v282_v37  ;;  %v215_v41 = vpop.permute.xlu0 %214  ;;  %v1018_v9 = vpop.permute.xlu2 %149  ;;  %v181_v36 = vperm.slane %v948_v12, 4  ;;  %v182_v37 = vperm.slane %v950_v13, 4 }
  0x96   :  { %v217_v42 = vpop.permute.xlu1 %216 }
  0x97   :  { %v219_v43 = vsel %vm218_vm3, %v215_v41, %v217_v42 }
  0x98   :  { %v229_v45 = vmul.f32 %v225_v39, %v219_v43 }
  0x9a   :  { %v267_v47 = vpack.c.bf16 %v229_v45, %v208_v44 }
  0x9c   :  { %320 = vmatpush.bf16.msra.mxu2 %v267_v47 }
  0x9d   :  { %v211_v54 = vpop.permute.xlu0 %210  ;;  %v133_v30 = vpop.permute.xlu2 %132 }
  0x9e   :  { %v222_v55 = vsel %vm218_vm3, %v217_v42, %v211_v54  ;;  %v173_v56 = vpop.permute.xlu1 %172 }
  0x9f   :  { %v230_v59 = vmul.f32 %v226_v50, %v222_v55  ;;  %v177_v60 = vsel %vm176_vm4, %v173_v56, %v175_v26 }
  0xa0   :  { %v187_v61 = vmul.f32 %v183_v53, %v177_v60 }
  0xa1   :  { %v268_v62 = vpack.c.bf16 %v230_v59, %v209_v57 }
  0xa2   :  { %v263_v63 = vpack.c.bf16 %v187_v61, %v868_v0 }
  0xa3   :  { %333 = vmatpush.bf16.msra.mxu3 %v268_v62 }
  0xa4   :  { %321 = vmatpush.bf16.msra.mxu2 %v263_v63 }
  0xa5   :  { %v192_v21 = vpop.permute.xlu0 %191  ;;  %v87_v47 = vpop.permute.xlu2 %86 }
  0xa6   :  { %v199_v22 = vsel %vm197_vm2, %v192_v21, %v940_v4  ;;  %v200_v0 = vsel %vm197_vm2, %v942_v8, %v192_v21  ;;  %v213_v23 = vpop.permute.xlu1 %212  ;;  %v120_v21 = vperm.slane %v952_v14, 1 }
  0xa7   :  { %v206_v2 = vmul.f32 %v202_v5, %v200_v0  ;;  %v207_v24 = vmul.f32 %v203_v6, %v199_v22  ;;  %v220_v25 = vsel %vm218_vm3, %v213_v23, %v215_v41  ;;  %v221_v26 = vsel %vm218_vm3, %v211_v54, %v213_v23  ;;  %334 = vmatpush.bf16.msra.mxu3 %v264_v7 }
  0xa8   :  { %v227_v4 = vmul.f32 %v223_v19, %v221_v26  ;;  %v228_v8 = vmul.f32 %v224_v20, %v220_v25  ;;  %v99_v7 = vperm.slane %v952_v14, 0  ;;  %v139_v26 = vperm.slane %v948_v12, 2 }
  0xaa   :  { %v265_v27 = vpack.c.bf16 %v227_v4, %v206_v2  ;;  %v266_v28 = vpack.c.bf16 %v228_v8, %v207_v24 }
  0xac   :  { %294 = vmatpush.bf16.msra.mxu0 %v265_v27  ;;  %307 = vmatpush.bf16.msra.mxu1 %v266_v28  ;;  %v140_v28 = vperm.slane %v950_v13, 2 }
  0xad   :  { %v129_v29 = vpop.permute.xlu0 %128  ;;  %v127_v63 = vpop.permute.xlu2 %126 }
  0xae   :  { %v131_v31 = vpop.permute.xlu1 %130  ;;  %v138_v27 = vsel %vm134_vm5, %v133_v30, %v127_v63 }
  0xaf   :  { %v136_v35 = vsel %vm134_vm5, %v129_v29, %v131_v31 }
  0xb0   :  { %v145_v42 = vmul.f32 %v141_v32, %v136_v35  ;;  %v161_v35 = vperm.slane %v950_v13, 3 }
  0xb5   :  { %v152_v38 = vpop.permute.xlu0 %151  ;;  %v112_v4 = vpop.permute.xlu2 %111 }
  0xb6   :  { %v157_v40 = vsel %vm155_vm6, %v1018_v9, %v152_v38  ;;  %v171_v41 = vpop.permute.xlu1 %170 }
  0xb7   :  { %v166_v43 = vmul.f32 %v162_v33, %v157_v40  ;;  %v178_v44 = vsel %vm176_vm4, %v171_v41, %v173_v56  ;;  %v179_v45 = vsel %vm176_vm4, %v169_v46, %v171_v41  ;;  %v163_v56 = vperm.slane %v946_v11, 3 }
  0xb8   :  { %v185_v51 = vmul.f32 %v181_v36, %v179_v45  ;;  %v186_v52 = vmul.f32 %v182_v37, %v178_v44  ;;  %v135_v46 = vsel %vm134_vm5, %v131_v31, %v133_v30  ;;  %v160_v31 = vperm.slane %v948_v12, 3 }
  0xb9   :  { %v259_v54 = vpack.c.bf16 %v166_v43, %v145_v42  ;;  %v121_v40 = vperm.slane %v946_v11, 1  ;;  %v100_v41 = vperm.slane %v946_v11, 0  ;;  %v252_v42 = vld [vmem:[#allocation5] sm:$0xf]  ;;  %v143_v44 = vmul.f32 %v139_v26, %v138_v27 }
  0xba   :  { %v261_v55 = vpack.c.bf16 %v185_v51, %v870_v1  ;;  %v262_v57 = vpack.c.bf16 %v186_v52, %v880_v3  ;;  %v146_v1 = vmul.f32 %v142_v58, %v135_v46 }
  0xbb   :  { %322 = vmatpush.bf16.msra.mxu2 %v259_v54 }
  0xbc   :  { %295 = vmatpush.bf16.msra.mxu0 %v261_v55  ;;  %308 = vmatpush.bf16.msra.mxu1 %v262_v57 }
  0xbd   :  { %v154_v59 = vpop.permute.xlu0 %153 }
  0xbe   :  { %v156_v60 = vsel %vm155_vm6, %v152_v38, %v154_v59  ;;  %v85_v61 = vpop.permute.xlu1 %84  ;;  %v137_v38 = vsel %vm134_vm5, %v127_v63, %v129_v29  ;;  %v119_v63 = vperm.slane %v950_v13, 1 }
  0xbf   :  { %v167_v3 = vmul.f32 %v163_v56, %v156_v60  ;;  %v94_v22 = vsel %vm92_vm7, %v85_v61, %v87_v47  ;;  %v144_v52 = vmul.f32 %v140_v28, %v137_v38 }
  0xc0   :  { %v103_v24 = vmul.f32 %v99_v7, %v94_v22 }
  0xc1   :  { %v260_v62 = vpack.c.bf16 %v167_v3, %v146_v1  ;;  %v97_v3 = vperm.slane %v948_v12, 0 }
  0xc3   :  { %335 = vmatpush.bf16.msra.mxu3 %v260_v62  ;;  %v98_v62 = vperm.slane %v950_v13, 0 }
  0xc5   :  { %v108_v0 = vpop.permute.xlu0 %107 }
  0xc6   :  { %v110_v23 = vpop.permute.xlu1 %109 }
  0xc7   :  { %v115_v2 = vsel %vm113_vm8, %v108_v0, %v110_v23  ;;  %v114_v43 = vsel %vm113_vm8, %v110_v23, %v112_v4 }
  0xc8   :  { %v124_v25 = vmul.f32 %v120_v21, %v115_v2 }
  0xca   :  { %v255_v8 = vpack.c.bf16 %v124_v25, %v103_v24 }
  0xcc   :  { %323 = vmatpush.bf16.msra.mxu2 %v255_v8 }
  0xcd   :  { %v148_v30 = vpop.permute.xlu0 %147 }
  0xce   :  { %v158_v45 = vsel %vm155_vm6, %v148_v30, %v1018_v9  ;;  %v159_v29 = vsel %vm155_vm6, %v154_v59, %v148_v30  ;;  %v89_v51 = vpop.permute.xlu1 %88  ;;  %v125_v9 = vmul.f32 %v121_v40, %v114_v43 }
  0xcf   :  { %v164_v54 = vmul.f32 %v160_v31, %v159_v29  ;;  %v165_v55 = vmul.f32 %v161_v35, %v158_v45  ;;  %v93_v57 = vsel %vm92_vm7, %v87_v47, %v89_v51  ;;  %667 = vmatmul.msk.bf16.vlgmr.msra.gmra.mxu2 %vm273_vm9, %v252_v42  ;;  %v118_v47 = vperm.slane %v948_v12, 1 }
  0xd0   :  { %v104_v46 = vmul.f32 %v100_v41, %v93_v57 }
  0xd1   :  { %v257_v59 = vpack.c.bf16 %v164_v54, %v143_v44  ;;  %v258_v60 = vpack.c.bf16 %v165_v55, %v144_v52 }
  0xd2   :  { %v256_v1 = vpack.c.bf16 %v125_v9, %v104_v46 }
  0xd3   :  { %296 = vmatpush.bf16.msra.mxu0 %v257_v59  ;;  %309 = vmatpush.bf16.msra.mxu1 %v258_v60 }
  0xd4   :  { %336 = vmatpush.bf16.msra.mxu3 %v256_v1 }
  0xd5   :  { %v83_v22 = vpop.permute.xlu0 %82 }
  0xd6   :  { %v95_v23 = vsel %vm92_vm7, %v83_v22, %v85_v61  ;;  %v96_v2 = vsel %vm92_vm7, %v89_v51, %v83_v22  ;;  %v106_v24 = vpop.permute.xlu1 %105 }
  0xd7   :  { %v101_v25 = vmul.f32 %v97_v3, %v96_v2  ;;  %v102_v8 = vmul.f32 %v98_v62, %v95_v23  ;;  %v116_v27 = vsel %vm113_vm8, %v106_v24, %v108_v0  ;;  %v117_v38 = vsel %vm113_vm8, %v112_v4, %v106_v24  ;;  %668 = vmatmul.msk.bf16.vlgmr.msra.gmra.mxu3 %vm273_vm9, %v252_v42 }
  0xd8   :  { %v122_v61 = vmul.f32 %v118_v47, %v117_v38  ;;  %v123_v43 = vmul.f32 %v119_v63, %v116_v27 }
  0xda   :  { %v253_v30 = vpack.c.bf16 %v122_v61, %v101_v25  ;;  %v254_v44 = vpack.c.bf16 %v123_v43, %v102_v8 }
  0xdc   :  { %297 = vmatpush.bf16.msra.mxu0 %v253_v30  ;;  %310 = vmatpush.bf16.msra.mxu1 %v254_v44 }
  0xdf   :  { %665 = vmatmul.msk.bf16.vlgmr.msra.gmra.mxu0 %vm273_vm9, %v252_v42  ;;  %666 = vmatmul.msk.bf16.vlgmr.msra.gmra.mxu1 %vm273_vm9, %v252_v42 }
 0x152   :  { %v325_v0 = vpop.f32.mrf.mxu2 }
 0x153   :  { %v344_v52 = vmul.f32 %v325_v0, %v325_v0 }
 0x15a   :  { %v338_v45 = vpop.f32.mrf.mxu3  ;;  %v327_v29 = vpop.f32.mrf.mxu2 }
 0x15b   :  { %v345_v46 = vmul.f32 %v338_v45, %v338_v45 }
 0x15c   :  { %v299_v4 = vpop.f32.mrf.mxu0  ;;  %v312_v51 = vpop.f32.mrf.mxu1 }
 0x15d   :  { %v342_v54 = vmul.f32 %v299_v4, %v299_v4  ;;  %v343_v55 = vmul.f32 %v312_v51, %v312_v51  ;;  %v346_v57 = vadd.f32 %v312_v51, %v299_v4 }
 0x15f   :  { %v347_v9 = vadd.f32 %v346_v57, %v325_v0  ;;  %v351_v59 = vadd.f32 %v343_v55, %v342_v54 }
 0x161   :  { %v348_v60 = vadd.f32 %v347_v9, %v338_v45  ;;  %v352_v1 = vadd.f32 %v351_v59, %v344_v52 }
 0x162   :  { %v340_v22 = vpop.f32.mrf.mxu3 }
 0x163   :  { %349 = vadd.xlane.f32.xlu2 %v348_v60  ;;  %v353_v23 = vadd.f32 %v352_v1, %v345_v46 }
 0x164   :  { %v301_v2 = vpop.f32.mrf.mxu0  ;;  %v314_v24 = vpop.f32.mrf.mxu1 }
 0x165   :  { %354 = vadd.xlane.f32.xlu0 %v353_v23 }
 0x1d6   :  { %v350_v42 = vpop.xlane.xlu2 %349 }
 0x1d7   :  { %v356_v25 = vmul.f32 0.001953125, %v350_v42 }
 0x1d8   :  { %v355_v8 = vpop.xlane.xlu0 %354 }
 0x1d9   :  { %v358_v27 = vmul.f32 %v356_v25, %v356_v25  ;;  %v357_v38 = vmul.f32 0.001953125, %v355_v8  ;;  %v363_v9 = vsub.f32 %v325_v0, %v356_v25  ;;  %v364_v46 = vsub.f32 %v338_v45, %v356_v25 }
 0x1da   :  { %v361_v2 = vsub.f32 %v299_v4, %v356_v25  ;;  %v362_v0 = vsub.f32 %v312_v51, %v356_v25 }
 0x1db   :  { %v359_v61 = vsub.f32 %v357_v38, %v358_v27 }
 0x1dd   :  { %v360_v43 = vmax.f32 %v359_v61, 0.0 }
 0x1df   :  { %v365_v30 = vadd.f32 1e-05, %v360_v43 }
 0x1e1   :  { %686 = vrsqrt.f32 %v365_v30  ;;  %vm372_vm11 = vweird.f32 %v365_v30 }
 0x1e7   :  { %v687_v44 = vpop.eup %686 }
 0x1e8   :  { %v367_v29 = vmul.f32 %v687_v44, %v365_v30  ;;  %vm373_vm10 = vweird.f32 %v687_v44 }
 0x1e9   :  { %vm374_vm12 = vmor %vm372_vm11, %vm373_vm10 }
 0x1ea   :  { %v368_v54 = vmul.f32 %v687_v44, %v367_v29 }
 0x1ec   :  { %v369_v55 = vmul.f32 0.5, %v368_v54 }
 0x1ee   :  { %v370_v52 = vsub.f32 1.5, %v369_v55 }
 0x1f0   :  { %v371_v57 = vmul.f32 %v687_v44, %v370_v52 }
 0x1f2   :  { %v375_v59 = vsel %vm374_vm12, %v687_v44, %v371_v57 }
 0x1f3   :  { %v378_v60 = vmul.f32 %v375_v59, %v363_v9  ;;  %v379_v1 = vmul.f32 %v375_v59, %v364_v46  ;;  %v376_v45 = vmul.f32 %v375_v59, %v361_v2  ;;  %v377_v24 = vmul.f32 %v375_v59, %v362_v0 }
 0x1f5   :  { %v1142_v22 = vmax.f32 %v378_v60, 0.0  ;;  %v1144_v23 = vmax.f32 %v379_v1, 0.0  ;;  %v1158_v42 = vmax.f32 %v376_v45, 0.0  ;;  %v1160_v8 = vmax.f32 %v377_v24, 0.0 }
 0x1f7   :  { %486 = vrot.lane.b32.xlu0 %v1144_v23, %s824_s7  ;;  %470 = vrot.lane.b32.xlu2 %v1144_v23, %s822_s2 }
 0x1f8   :  { %500 = vrot.lane.b32.xlu1 %v1142_v22, %s823_s3 }
 0x1ff   :  { %454 = vrot.lane.b32.xlu0 %v1144_v23, %s825_s8  ;;  %452 = vrot.lane.b32.xlu2 %v1142_v22, %s825_s8 }
 0x200   :  { %502 = vrot.lane.b32.xlu1 %v1144_v23, %s823_s3 }
 0x207   :  { %482 = vrot.lane.b32.xlu2 %v1160_v8, %s824_s7  ;;  %448 = vrot.lane.b32.xlu0 %v1158_v42, %s825_s8 }
 0x208   :  { %496 = vrot.lane.b32.xlu1 %v1158_v42, %s823_s3 }
 0x20f   :  { %420 = vrot.lane.b32.xlu2 %v1142_v22, %s826_s9  ;;  %434 = vrot.lane.b32.xlu0 %v1160_v8, %s827_s10 }
 0x210   :  { %498 = vrot.lane.b32.xlu1 %v1160_v8, %s823_s3 }
 0x217   :  { %450 = vrot.lane.b32.xlu2 %v1160_v8, %s825_s8  ;;  %422 = vrot.lane.b32.xlu0 %v1144_v23, %s826_s9 }
 0x218   :  { %468 = vrot.lane.b32.xlu1 %v1142_v22, %s822_s2 }
 0x21f   :  { %386 = vrot.lane.b32.xlu2 %v1160_v8, %s828_s11  ;;  %388 = vrot.lane.b32.xlu0 %v1142_v22, %s828_s11 }
 0x220   :  { %484 = vrot.lane.b32.xlu1 %v1142_v22, %s824_s7 }
 0x227   :  { %404 = vrot.lane.b32.xlu2 %v1142_v22, %s829_s12  ;;  %416 = vrot.lane.b32.xlu0 %v1158_v42, %s826_s9 }
 0x228   :  { %464 = vrot.lane.b32.xlu1 %v1158_v42, %s822_s2 }
 0x22f   :  { %390 = vrot.lane.b32.xlu2 %v1144_v23, %s828_s11  ;;  %406 = vrot.lane.b32.xlu0 %v1144_v23, %s829_s12 }
 0x230   :  { %480 = vrot.lane.b32.xlu1 %v1158_v42, %s824_s7 }
 0x237   :  { %400 = vrot.lane.b32.xlu2 %v1158_v42, %s829_s12 }
 0x238   :  { %466 = vrot.lane.b32.xlu1 %v1160_v8, %s822_s2 }
 0x240   :  { %418 = vrot.lane.b32.xlu1 %v1160_v8, %s826_s9 }
 0x248   :  { %436 = vrot.lane.b32.xlu1 %v1142_v22, %s827_s10 }
 0x250   :  { %438 = vrot.lane.b32.xlu1 %v1144_v23, %s827_s10 }
 0x251   :  { %v471_v54 = vpop.permute.xlu2 %470 }
 0x258   :  { %402 = vrot.lane.b32.xlu1 %v1160_v8, %s829_s12 }
 0x259   :  { %v453_v2 = vpop.permute.xlu2 %452 }
 0x260   :  { %432 = vrot.lane.b32.xlu1 %v1158_v42, %s827_s10 }
 0x268   :  { %384 = vrot.lane.b32.xlu1 %v1158_v42, %s828_s11 }
 0x269   :  { %v487_v43 = vpop.permute.xlu0 %486 }
 0x26a   :  { %v501_v4 = vpop.permute.xlu1 %500 }
 0x271   :  { %v455_v46 = vpop.permute.xlu0 %454 }
 0x272   :  { %v503_v51 = vpop.permute.xlu1 %502 }
 0x273   :  { %v504_v25 = vsel %vm239_vm0, %v501_v4, %v503_v51 }
 0x274   :  { %v510_v27 = vmul.f32 %v504_v25, %v246_v15  ;;  %v483_v25 = vpop.permute.xlu2 %482 }
 0x276   :  { %v531_v38 = vpack.c.bf16 %v510_v27, %v510_v27 }
 0x278   :  { %v543_v61 = vsel %vm277_vm1, %v531_v38, 0 }
 0x279   :  { %577 = vmatpush.bf16.msrb.mxu2 %v543_v61 }
 0x27a   :  { %v497_v30 = vpop.permute.xlu1 %496 }
 0x27b   :  { %v507_v44 = vsel %vm239_vm0, %v503_v51, %v497_v30 }
 0x27c   :  { %v511_v29 = vmul.f32 %v507_v44, %v247_v18 }
 0x27e   :  { %v532_v55 = vpack.c.bf16 %v511_v29, %v511_v29 }
 0x280   :  { %v546_v52 = vsel %vm277_vm1, %v532_v55, 0 }
 0x281   :  { %590 = vmatpush.bf16.msrb.mxu3 %v546_v52 }
 0x282   :  { %v499_v57 = vpop.permute.xlu1 %498 }
 0x283   :  { %v505_v15 = vsel %vm239_vm0, %v499_v57, %v501_v4  ;;  %v506_v9 = vsel %vm239_vm0, %v497_v30, %v499_v57  ;;  %v449_v4 = vpop.permute.xlu0 %448  ;;  %v421_v57 = vpop.permute.xlu2 %420 }
 0x284   :  { %v508_v59 = vmul.f32 %v506_v9, %v244_v16  ;;  %v509_v60 = vmul.f32 %v505_v15, %v245_v17  ;;  %v456_v16 = vsel %vm176_vm4, %v453_v2, %v455_v46 }
 0x285   :  { %v462_v30 = vmul.f32 %v456_v16, %v183_v53 }
 0x286   :  { %v529_v18 = vpack.c.bf16 %v508_v59, %v508_v59  ;;  %v530_v1 = vpack.c.bf16 %v509_v60, %v509_v60 }
 0x287   :  { %v523_v52 = vpack.c.bf16 %v462_v30, %v1142_v22 }
 0x288   :  { %v537_v0 = vsel %vm277_vm1, %v529_v18, 0  ;;  %v540_v45 = vsel %vm277_vm1, %v530_v1, 0 }
 0x289   :  { %551 = vmatpush.bf16.msrb.mxu0 %v537_v0  ;;  %564 = vmatpush.bf16.msrb.mxu1 %v540_v45 }
 0x28a   :  { %v469_v24 = vpop.permute.xlu1 %468 }
 0x28b   :  { %v472_v51 = vsel %vm197_vm2, %v469_v24, %v471_v54  ;;  %v1246_v29 = vpop.permute.xlu0 %434  ;;  %v451_v60 = vpop.permute.xlu2 %450 }
 0x28c   :  { %v478_v38 = vmul.f32 %v472_v51, %v204_v34 }
 0x292   :  { %v485_v27 = vpop.permute.xlu1 %484 }
 0x293   :  { %v488_v17 = vsel %vm218_vm3, %v485_v27, %v487_v43  ;;  %v1251_v9 = vpop.permute.xlu0 %422  ;;  %v489_v1 = vsel %vm218_vm3, %v483_v25, %v485_v27 }
 0x294   :  { %v494_v61 = vmul.f32 %v488_v17, %v225_v39  ;;  %v459_v39 = vsel %vm176_vm4, %v455_v46, %v449_v4  ;;  %v493_v27 = vmul.f32 %v489_v1, %v224_v20 }
 0x295   :  { %v463_v18 = vmul.f32 %v459_v39, %v184_v49 }
 0x296   :  { %v527_v44 = vpack.c.bf16 %v494_v61, %v478_v38  ;;  %v387_v38 = vpop.permute.xlu2 %386 }
 0x298   :  { %578 = vmatpush.bf16.msrb.mxu2 %v527_v44 }
 0x29a   :  { %v465_v55 = vpop.permute.xlu1 %464 }
 0x29b   :  { %v475_v15 = vsel %vm197_vm2, %v471_v54, %v465_v55  ;;  %v389_v51 = vpop.permute.xlu0 %388 }
 0x29c   :  { %579 = vmatpush.bf16.msrb.mxu2 %v523_v52  ;;  %v479_v59 = vmul.f32 %v475_v15, %v205_v48  ;;  %v457_v48 = vsel %vm176_vm4, %v451_v60, %v453_v2  ;;  %v424_v52 = vsel %vm134_vm5, %v421_v57, %v1251_v9 }
 0x2a2   :  { %v481_v34 = vpop.permute.xlu1 %480 }
 0x2a3   :  { %v491_v53 = vsel %vm218_vm3, %v487_v43, %v481_v34  ;;  %v490_v46 = vsel %vm218_vm3, %v481_v34, %v483_v25  ;;  %v524_v43 = vpack.c.bf16 %v463_v18, %v1144_v23  ;;  %v393_v18 = vsel %vm92_vm7, %v387_v38, %v389_v51 }
 0x2a4   :  { %v495_v22 = vmul.f32 %v491_v53, %v226_v50  ;;  %v458_v50 = vsel %vm176_vm4, %v449_v4, %v451_v60  ;;  %v492_v25 = vmul.f32 %v490_v46, %v223_v19 }
 0x2a5   :  { %v460_v4 = vmul.f32 %v458_v50, %v181_v36 }
 0x2a6   :  { %v528_v54 = vpack.c.bf16 %v495_v22, %v479_v59 }
 0x2a7   :  { %v521_v19 = vpack.c.bf16 %v460_v4, %v1158_v42 }
 0x2a8   :  { %591 = vmatpush.bf16.msrb.mxu3 %v528_v54 }
 0x2aa   :  { %v467_v0 = vpop.permute.xlu1 %466 }
 0x2ab   :  { %v473_v49 = vsel %vm197_vm2, %v467_v0, %v469_v24  ;;  %v474_v45 = vsel %vm197_vm2, %v465_v55, %v467_v0  ;;  %v461_v24 = vmul.f32 %v457_v48, %v182_v37  ;;  %v405_v37 = vpop.permute.xlu2 %404  ;;  %v512_v0 = vld [vmem:[#allocation7] sm:$0xf] }
 0x2ac   :  { %v476_v23 = vmul.f32 %v474_v45, %v202_v5  ;;  %v477_v2 = vmul.f32 %v473_v49, %v203_v6  ;;  %592 = vmatpush.bf16.msrb.mxu3 %v524_v43  ;;  %v417_v6 = vpop.permute.xlu0 %416 }
 0x2ad   :  { %v522_v5 = vpack.c.bf16 %v461_v24, %v1160_v8  ;;  %v427_v11 = vsel %vm134_vm5, %v1251_v9, %v417_v6 }
 0x2ae   :  { %v525_v16 = vpack.c.bf16 %v492_v25, %v476_v23  ;;  %v526_v17 = vpack.c.bf16 %v493_v27, %v477_v2 }
 0x2b0   :  { %552 = vmatpush.bf16.msrb.mxu0 %v525_v16  ;;  %565 = vmatpush.bf16.msrb.mxu1 %v526_v17 }
 0x2b2   :  { %v419_v20 = vpop.permute.xlu1 %418 }
 0x2b3   :  { %v425_v61 = vsel %vm134_vm5, %v419_v20, %v421_v57  ;;  %v391_v53 = vpop.permute.xlu2 %390 }
 0x2b4   :  { %553 = vmatpush.bf16.msrb.mxu0 %v521_v19  ;;  %566 = vmatpush.bf16.msrb.mxu1 %v522_v5  ;;  %v430_v44 = vmul.f32 %v425_v61, %v141_v32  ;;  %v407_v8 = vpop.permute.xlu0 %406  ;;  %v431_v32 = vmul.f32 %v424_v52, %v142_v58  ;;  %v392_v59 = vsel %vm92_vm7, %v389_v51, %v391_v53 }
 0x2b5   :  { %v408_v34 = vsel %vm113_vm8, %v405_v37, %v407_v8  ;;  %v399_v60 = vmul.f32 %v392_v59, %v100_v41  ;;  %v426_v41 = vsel %vm134_vm5, %v417_v6, %v419_v20 }
 0x2b6   :  { %v415_v57 = vmul.f32 %v408_v34, %v121_v40  ;;  %v429_v48 = vmul.f32 %v426_v41, %v140_v28 }
 0x2b8   :  { %v516_v1 = vpack.c.bf16 %v415_v57, %v399_v60 }
 0x2ba   :  { %v437_v30 = vpop.permute.xlu1 %436 }
 0x2bb   :  { %v441_v36 = vsel %vm155_vm6, %v1246_v29, %v437_v30 }
 0x2bc   :  { %v446_v42 = vmul.f32 %v441_v36, %v162_v33 }
 0x2be   :  { %v519_v55 = vpack.c.bf16 %v446_v42, %v430_v44 }
 0x2c0   :  { %580 = vmatpush.bf16.msrb.mxu2 %v519_v55 }
 0x2c2   :  { %v439_v15 = vpop.permute.xlu1 %438 }
 0x2c3   :  { %v440_v39 = vsel %vm155_vm6, %v437_v30, %v439_v15 }
 0x2c4   :  { %v447_v33 = vmul.f32 %v440_v39, %v163_v56  ;;  %v398_v56 = vmul.f32 %v393_v18, %v99_v7 }
 0x2c6   :  { %v520_v22 = vpack.c.bf16 %v447_v33, %v431_v32 }
 0x2c8   :  { %593 = vmatpush.bf16.msrb.mxu3 %v520_v22 }
 0x2ca   :  { %v403_v54 = vpop.permute.xlu1 %402 }
 0x2cb   :  { %v409_v58 = vsel %vm113_vm8, %v403_v54, %v405_v37 }
 0x2cc   :  { %v414_v46 = vmul.f32 %v409_v58, %v120_v21  ;;  %594 = vmatpush.bf16.msrb.mxu3 %v516_v1  ;;  %v428_v21 = vmul.f32 %v427_v11, %v139_v26 }
 0x2ce   :  { %v515_v40 = vpack.c.bf16 %v414_v46, %v398_v56 }
 0x2cf   :  { %672 = vmatmul.msk.bf16.vlgmr.msrb.gmra.mxu3 %vm273_vm9, %v512_v0 }
 0x2d0   :  { %581 = vmatpush.bf16.msrb.mxu2 %v515_v40 }
 0x2d2   :  { %v433_v43 = vpop.permute.xlu1 %432 }
 0x2d3   :  { %v442_v7 = vsel %vm155_vm6, %v433_v43, %v1246_v29  ;;  %v443_v14 = vsel %vm155_vm6, %v439_v15, %v433_v43  ;;  %671 = vmatmul.msk.bf16.vlgmr.msrb.gmra.mxu2 %vm273_vm9, %v512_v0  ;;  %v401_v29 = vpop.permute.xlu2 %400 }
 0x2d4   :  { %v444_v9 = vmul.f32 %v443_v14, %v160_v31  ;;  %v445_v50 = vmul.f32 %v442_v7, %v161_v35  ;;  %v411_v51 = vsel %vm113_vm8, %v407_v8, %v401_v29  ;;  %v410_v26 = vsel %vm113_vm8, %v401_v29, %v403_v54 }
 0x2d5   :  { %v412_v35 = vmul.f32 %v411_v51, %v118_v47  ;;  %v413_v25 = vmul.f32 %v410_v26, %v119_v63 }
 0x2d6   :  { %v517_v49 = vpack.c.bf16 %v444_v9, %v428_v21  ;;  %v518_v45 = vpack.c.bf16 %v445_v50, %v429_v48 }
 0x2d8   :  { %554 = vmatpush.bf16.msrb.mxu0 %v517_v49  ;;  %567 = vmatpush.bf16.msrb.mxu1 %v518_v45 }
 0x2da   :  { %v385_v27 = vpop.permute.xlu1 %384 }
 0x2db   :  { %v394_v28 = vsel %vm92_vm7, %v385_v27, %v387_v38  ;;  %v395_v31 = vsel %vm92_vm7, %v391_v53, %v385_v27 }
 0x2dc   :  { %v396_v23 = vmul.f32 %v395_v31, %v97_v3  ;;  %v397_v2 = vmul.f32 %v394_v28, %v98_v62 }
 0x2de   :  { %v513_v24 = vpack.c.bf16 %v412_v35, %v396_v23  ;;  %v514_v4 = vpack.c.bf16 %v413_v25, %v397_v2 }
 0x2e0   :  { %555 = vmatpush.bf16.msrb.mxu0 %v513_v24  ;;  %568 = vmatpush.bf16.msrb.mxu1 %v514_v4 }
 0x2e3   :  { %669 = vmatmul.msk.bf16.vlgmr.msrb.gmra.mxu0 %vm273_vm9, %v512_v0  ;;  %670 = vmatmul.msk.bf16.vlgmr.msrb.gmra.mxu1 %vm273_vm9, %v512_v0 }
 0x352   :  { %v596_v10 = vpop.f32.mrf.mxu3 }
 0x353   :  { %v603_v62 = vmul.f32 %v596_v10, %v596_v10 }
 0x356   :  { %v583_v16 = vpop.f32.mrf.mxu2 }
 0x357   :  { %v602_v20 = vmul.f32 %v583_v16, %v583_v16 }
 0x35a   :  { %v598_v47 = vpop.f32.mrf.mxu3 }
 0x35e   :  { %v585_v17 = vpop.f32.mrf.mxu2 }
 0x360   :  { %v557_v38 = vpop.f32.mrf.mxu0  ;;  %v570_v63 = vpop.f32.mrf.mxu1 }
 0x361   :  { %v600_v12 = vmul.f32 %v557_v38, %v557_v38  ;;  %v601_v3 = vmul.f32 %v570_v63, %v570_v63  ;;  %v604_v19 = vadd.f32 %v570_v63, %v557_v38 }
 0x363   :  { %v605_v13 = vadd.f32 %v604_v19, %v583_v16  ;;  %v609_v5 = vadd.f32 %v601_v3, %v600_v12 }
 0x365   :  { %v606_v6 = vadd.f32 %v605_v13, %v596_v10  ;;  %v610_v61 = vadd.f32 %v609_v5, %v602_v20 }
 0x367   :  { %607 = vadd.xlane.f32.xlu0 %v606_v6  ;;  %v611_v37 = vadd.f32 %v610_v61, %v603_v62 }
 0x368   :  { %v559_v30 = vpop.f32.mrf.mxu0  ;;  %v572_v36 = vpop.f32.mrf.mxu1 }
 0x369   :  { %612 = vadd.xlane.f32.xlu1 %v611_v37 }
 0x3da   :  { %v608_v44 = vpop.xlane.xlu0 %607 }
 0x3db   :  { %v614_v42 = vmul.f32 0.001953125, %v608_v44 }
 0x3dc   :  { %v613_v55 = vpop.xlane.xlu1 %612 }
 0x3dd   :  { %v616_v8 = vmul.f32 %v614_v42, %v614_v42  ;;  %v615_v52 = vmul.f32 0.001953125, %v613_v55  ;;  %v619_v60 = vsub.f32 %v557_v38, %v614_v42  ;;  %v620_v18 = vsub.f32 %v570_v63, %v614_v42 }
 0x3de   :  { %v621_v54 = vsub.f32 %v583_v16, %v614_v42  ;;  %v622_v1 = vsub.f32 %v596_v10, %v614_v42 }
 0x3df   :  { %v617_v15 = vsub.f32 %v615_v52, %v616_v8 }
 0x3e1   :  { %v618_v34 = vmax.f32 %v617_v15, 0.0 }
 0x3e3   :  { %v623_v39 = vadd.f32 1e-05, %v618_v34 }
 0x3e5   :  { %688 = vrsqrt.f32 %v623_v39  ;;  %vm630_vm14 = vweird.f32 %v623_v39 }
 0x3eb   :  { %v689_v53 = vpop.eup %688 }
 0x3ec   :  { %v625_v32 = vmul.f32 %v689_v53, %v623_v39  ;;  %vm631_vm13 = vweird.f32 %v689_v53 }
 0x3ed   :  { %vm632_vm15 = vmor %vm630_vm14, %vm631_vm13 }
 0x3ee   :  { %v626_v33 = vmul.f32 %v689_v53, %v625_v32 }
 0x3f0   :  { %v627_v59 = vmul.f32 0.5, %v626_v33 }
 0x3f2   :  { %v628_v57 = vsub.f32 1.5, %v627_v59 }
 0x3f4   :  { %v629_v22 = vmul.f32 %v689_v53, %v628_v57 }
 0x3f6   :  { %v633_v58 = vsel %vm632_vm15, %v689_v53, %v629_v22 }
 0x3f7   :  { %v634_v56 = vmul.f32 %v633_v58, %v619_v60  ;;  %v635_v46 = vmul.f32 %v633_v58, %v620_v18  ;;  %v636_v40 = vmul.f32 %v633_v58, %v621_v54  ;;  %v637_v0 = vmul.f32 %v633_v58, %v622_v1 }
 0x3f9   :  { %v638_v11 = vmax.f32 %v634_v56, 0.0  ;;  %v639_v41 = vmax.f32 %v635_v46, 0.0  ;;  %v640_v43 = vmax.f32 %v636_v40, 0.0  ;;  %v641_v7 = vmax.f32 %v637_v0, 0.0 }
 0x3fb   :  { %v642_v14 = vpack.c.bf16 %v639_v41, %v638_v11  ;;  %v643_v21 = vpack.c.bf16 %v641_v7, %v640_v43 }
 0x3fd   :  { %644 = vst [vmem:[#allocation10] sm:$0xff] %v642_v14 }
 0x3fe   :  { %645 = vst [vmem:[#allocation10 + $0x8] sm:$0xff] %v643_v21 }
 0x3ff   :  { %656 = dma.vmem_to_hbm [thread:$0]  %s652_s14, 256, %s654_s17, [#allocation4]  }
 0x400   :  { %816 = dma.done.wait [#allocation4], 256  }
 0x401   :  { %817 = vsyncadd [#allocation4], 4294967040 }
 0x402   :  { %661 = vsyncpa [#allocation3], 1 }
 0x403   :  { %662 = vsyncpa [#allocation6], 1 }
 0x404   :  { %663 = vsyncpa [#allocation9], 1 }
 0x405   :  { %664 = vsyncpa [#allocation4], 1 }

</bundles_post_ra>
